<compile_context>
chip_gen: v7x
topology: tpu7x:2x2x1
jax: 0.10.0
libtpu: 0.0.40
codegen_flags: <defaults>
</compile_context>

<pallas_src>
import functools

import jax
import jax.numpy as jnp
import numpy as np
from jax.experimental import pallas as pl
from jax.experimental.pallas import tpu as pltpu


def _fused_encoder_kernel(a1_ref, w1_ref, b1_ref, w2_ref, b2_ref, o_ref, *,
                          bt, hp1_pad, hp2):
    """One grid step = `bt` batch elements, both conv+BN+ReLU+pool blocks fused.

    a1_ref: (4*bt*hp1_pad, K1) bf16  layer-1 operand, rows = (pool offset, batch-in-tile, pooled H)
    w1_ref: (K1, L1p)          bf16  layer-1 block-Toeplitz weight (BN scale folded), lane-padded
    b1_ref: (1, L1p)           f32   folded conv1+BN1 bias, tiled over pooled W, lane-padded
    w2_ref: (L1p, 768)         bf16  layer-2 block-Toeplitz weight; lanes = (kernel row dh, pool-W pw)
    b2_ref: (1, 128)           f32   folded conv2+BN2 bias (lanes j2*C2 + c2)
    o_ref : (bt, hp2, 128)     f32   pooled layer-2 output, lane-dense
    """
    m1 = bt * hp1_pad

    # ---- layer 1: ONE MXU matmul (M = 4*bt*hp1_pad) covers the 3x3 conv at all four
    # 2x2-pool offsets for every batch element of the tile.
    y1 = jnp.dot(a1_ref[...], w1_ref[...], preferred_element_type=jnp.float32)
    # MaxPool2d(2) == max over the four aligned row blocks (one per pool offset).
    m = jnp.maximum(jnp.maximum(y1[0 * m1:1 * m1, :], y1[1 * m1:2 * m1, :]),
                    jnp.maximum(y1[2 * m1:3 * m1, :], y1[3 * m1:4 * m1, :]))
    # Conv bias + BN(eval) bias + ReLU once, after the pool (exact: affine shared across
    # pool positions, ReLU monotone).  Rows i >= Hp1 inside each hp1_pad block hold
    # relu(bias) garbage; the wrapper asserts layer 2 only reads rows <= Hp1-1.
    p1 = jnp.maximum(m + b1_ref[...], 0.0)               # (m1, L1p) f32
    p1b = p1.astype(jnp.bfloat16)                        # single aligned bf16 cast

    # ---- layer 2: ONE matmul with the 3 kernel rows unrolled into 256-lane groups,
    # recombined with row-shifted f32 adds (no sliced/packed bf16 matmul operands).
    y2 = jnp.dot(p1b, w2_ref[...], preferred_element_type=jnp.float32)   # (m1, 768)
    rc = m1 - 2
    y2c = (y2[0:rc, 0:256] + y2[1:rc + 1, 256:512] + y2[2:rc + 2, 512:768])  # (rc, 256)
    # MaxPool2d(2) over W = max of the two 128-lane halves (pw = 0 / 1).
    yw = jnp.maximum(y2c[:, 0:128], y2c[:, 128:256])     # (rc, 128)

    # Pool over H (pairwise row max) + folded bias + ReLU, stored per batch element as a
    # lane-dense (hp2, 128) slab — no lane concat / sublane->lane relayout.
    b2 = b2_ref[...]
    for b in range(bt):
        rows = []
        for j in range(hp2):
            r0 = b * hp1_pad + 2 * j
            rows.append(jnp.maximum(yw[r0:r0 + 1, :], yw[r0 + 1:r0 + 2, :]))
        slab = rows[0] if hp2 == 1 else jnp.concatenate(rows, axis=0)    # (hp2, 128)
        o_ref[b] = jnp.maximum(slab + b2, 0.0).astype(o_ref.dtype)


def _fold_bn(p, eps):
    """Fold eval-mode BatchNorm + conv bias into a per-channel (scale, bias)."""
    inv_std = 1.0 / jnp.sqrt(p["var"] + eps)
    scale = p["gamma"] * inv_std
    bias = (p["b"] - p["mean"]) * scale + p["beta"]
    return scale, bias


def _pick_b_tile(n, max_b_tile):
    """Largest batch tile <= max_b_tile dividing n, preferring grid length >= 2 so the
    "parallel" batch axis can shard across v7x's two TensorCores."""
    best = 1
    for bt in range(1, min(max_b_tile, n) + 1):
        if n % bt == 0 and (n // bt >= 2 or n == 1):
            best = bt
    return best


def make_cnn_encoder(params, in_shape, *, eps=1e-5, max_b_tile=4):
    """Builds a jitted forward(x_nchw) with all weight preparation hoisted out."""
    N, Cin, H, W = in_shape
    p1p, p2p = params["layer1"], params["layer2"]
    C1 = p1p["w"].shape[-1]
    C2 = p2p["w"].shape[-1]
    assert p1p["w"].shape[2] == Cin

    Hp1, Wp1 = (H - 2) // 2, (W - 2) // 2                # after layer 1 (conv3 pad0 + pool2)
    Hp2, Wp2 = (Hp1 - 2) // 2, (Wp1 - 2) // 2            # after layer 2
    assert Hp2 >= 1 and Wp2 >= 1, "input too small for two conv+pool blocks"
    assert Wp2 * C2 <= 128, "layer-2 pooled row must fit one 128-lane tile"
    # Layer 2 reads p1 rows <= 2*Hp2+1 <= Hp1-1, so the padded (garbage) p1 rows >= Hp1
    # are provably never consumed.
    assert 2 * Hp2 + 2 <= Hp1 and 2 * Wp2 + 2 <= Wp1

    hp1_pad = ((Hp1 + 7) // 8) * 8
    K1 = 3 * (2 * Wp1 + 1) * Cin
    L1 = Wp1 * C1
    L1p = ((L1 + 255) // 256) * 256                      # lane-pad -> unmasked VPU epilogue
    # TODO(synk): at real (non-toy) scale, build A1 in-kernel from NHWC blocks (cuts the
    # ~5x im2col HBM expansion), tile pooled-H / L1p, set vmem_limit_bytes for v7x's
    # 64 MiB VMEM and mark the constant weight specs pipeline_mode=pl.Buffered(1).
    assert L1p <= 2048 and Hp1 <= 64, "toy-scale fused kernel"

    bt = _pick_b_tile(N, max_b_tile)                     # B_TILE ~4 bounds the f32 y1 live range
    grid_n = N // bt

    # ---- hoisted weight preparation (runs once, not per forward call) ----------------
    s1, fb1 = _fold_bn(p1p, eps)
    s2, fb2 = _fold_bn(p2p, eps)

    # layer-1 block-Toeplitz weight: unrolls pooled W into lanes (j*C1 + c), BN scale folded.
    w1s = p1p["w"] * s1                                  # HWIO
    ind1 = np.zeros((3, 2 * Wp1 + 1, Wp1), np.float32)
    for j in range(Wp1):
        for dw in range(3):
            ind1[dw, 2 * j + dw, j] = 1.0
    w1m = jnp.einsum("hdic,dvj->hvijc", w1s, jnp.asarray(ind1)).reshape(K1, L1)
    w1m = jnp.pad(w1m, ((0, 0), (0, L1p - L1))).astype(jnp.bfloat16)
    b1_lane = jnp.pad(jnp.tile(fb1, Wp1), (0, L1p - L1)).reshape(1, L1p).astype(jnp.float32)

    # layer-2 block-Toeplitz weight: ONE (L1p, 3*256) matrix, lanes = dh*256 + pw*128 + j2*C2 + c2.
    w2s = p2p["w"] * s2
    ind2 = np.zeros((3, Wp1, 2, Wp2), np.float32)
    for pw in (0, 1):
        for j2 in range(Wp2):
            for dw in range(3):
                ind2[dw, 2 * j2 + pw + dw, pw, j2] = 1.0
    w2m = jnp.einsum("hdic,dvpj->vihpjc", w2s, jnp.asarray(ind2))   # (Wp1,C1,3,2,Wp2,C2)
    w2m = w2m.reshape(L1, 3, 2, Wp2 * C2)
    w2m = jnp.pad(w2m, ((0, L1p - L1), (0, 0), (0, 0), (0, 128 - Wp2 * C2)))
    w2m = w2m.reshape(L1p, 3 * 256).astype(jnp.bfloat16)
    b2_lane = jnp.pad(jnp.tile(fb2, Wp2), (0, 128 - Wp2 * C2)).reshape(1, 128)
    b2_lane = b2_lane.astype(jnp.float32)

    kernel = functools.partial(_fused_encoder_kernel, bt=bt, hp1_pad=hp1_pad, hp2=Hp2)

    a1_rows = grid_n * 4 * bt * hp1_pad
    flops = 2 * grid_n * (4 * bt * hp1_pad * K1 * L1p + bt * hp1_pad * L1p * 768)
    bytes_accessed = (a1_rows * K1 * 2 + K1 * L1p * 2 + L1p * 768 * 2
                      + L1p * 4 + 128 * 4 + N * Hp2 * 128 * 4)

    @jax.jit
    def forward(x_nchw):
        x = jnp.transpose(x_nchw, (0, 2, 3, 1))          # NCHW -> NHWC
        # layer-1 operand: rows = (pool offset ph,pw ; batch ; pooled row i); the K dim
        # holds the 3 x (2*Wp1+1) x Cin input window feeding every pooled output column.
        blocks = []
        for ph in (0, 1):
            for pw in (0, 1):
                sub = x[:, ph:ph + 2 * Hp1 + 1, pw:pw + 2 * Wp1 + 1, :]
                rows = [sub[:, dh:dh + 2 * Hp1 - 1:2, :, :] for dh in range(3)]
                blk = jnp.stack(rows, axis=2).reshape(N, Hp1, K1)
                blocks.append(jnp.pad(blk, ((0, 0), (0, hp1_pad - Hp1), (0, 0))))
        a1 = jnp.stack(blocks, axis=0)                   # (4, N, hp1_pad, K1)
        a1 = a1.reshape(4, grid_n, bt, hp1_pad, K1)
        a1 = jnp.transpose(a1, (1, 0, 2, 3, 4))          # (grid, 4, bt, hp1_pad, K1)
        a1 = a1.reshape(grid_n * 4 * bt * hp1_pad, K1).astype(jnp.bfloat16)

        out = pl.pallas_call(
            kernel,
            out_shape=jax.ShapeDtypeStruct((N, Hp2, 128), jnp.float32),
            grid=(grid_n,),
            in_specs=[
                pl.BlockSpec((4 * bt * hp1_pad, K1), lambda n: (n, 0)),
                pl.BlockSpec((K1, L1p), lambda n: (0, 0)),
                pl.BlockSpec((1, L1p), lambda n: (0, 0)),
                pl.BlockSpec((L1p, 768), lambda n: (0, 0)),
                pl.BlockSpec((1, 128), lambda n: (0, 0)),
            ],
            out_specs=pl.BlockSpec((bt, Hp2, 128), lambda n: (n, 0, 0)),
            compiler_params=pltpu.CompilerParams(
                dimension_semantics=("parallel",)),      # batch tiles -> both v7x TCs
            cost_estimate=pl.CostEstimate(flops=flops, transcendentals=0,
                                          bytes_accessed=bytes_accessed),
        )(a1, w1m, b1_lane, w2m, b2_lane)

        out = out[:, :, :Wp2 * C2].reshape(N, Hp2, Wp2, C2)
        return jnp.transpose(out, (0, 3, 1, 2))          # NHWC -> NCHW

    return forward


def _reference_forward(x_nchw, params, eps=1e-5):
    """Pure-JAX reference (f32), matching PyTorch eval-mode semantics."""
    x = jnp.transpose(x_nchw, (0, 2, 3, 1)).astype(jnp.float32)
    for name in ("layer1", "layer2"):
        p = params[name]
        N, H, W, Ci = x.shape
        Ho, Wo = H - 2, W - 2
        cols = [x[:, dh:dh + Ho, dw:dw + Wo, :] for dh in range(3) for dw in range(3)]
        patches = jnp.concatenate(cols, axis=-1)
        y = patches @ p["w"].reshape(9 * Ci, -1) + p["b"]
        inv_std = 1.0 / jnp.sqrt(p["var"] + eps)
        y = (y - p["mean"]) * (p["gamma"] * inv_std) + p["beta"]
        y = jnp.maximum(y, 0.0)
        Hp, Wp = Ho // 2, Wo // 2
        C = y.shape[-1]
        x = y[:, :2 * Hp, :2 * Wp, :].reshape(N, Hp, 2, Wp, 2, C).max(axis=(2, 4))
    return jnp.transpose(x, (0, 3, 1, 2))


def init_params(key):
    # TODO(synk): training-mode BatchNorm (batch statistics) not implemented; eval semantics used.
    def layer(k, ci, co):
        ks = jax.random.split(k, 6)
        return {
            "w": 0.1 * jax.random.normal(ks[0], (3, 3, ci, co), jnp.float32),  # HWIO
            "b": 0.1 * jax.random.normal(ks[1], (co,), jnp.float32),
            "gamma": 1.0 + 0.1 * jax.random.normal(ks[2], (co,), jnp.float32),
            "beta": 0.1 * jax.random.normal(ks[3], (co,), jnp.float32),
            "mean": 0.05 * jax.random.normal(ks[4], (co,), jnp.float32),
            "var": 0.9 + 0.1 * jnp.abs(jax.random.normal(ks[5], (co,), jnp.float32)),
        }
    k1, k2 = jax.random.split(key)
    return {"layer1": layer(k1, 3, 32), "layer2": layer(k2, 32, 32)}


if __name__ == "__main__":
    key = jax.random.PRNGKey(0)
    kx, kp = jax.random.split(key)
    N, Cin, H, W = 8, 3, 16, 16
    x = jax.random.normal(kx, (N, Cin, H, W), jnp.float32)    # NCHW, like PyTorch
    params = init_params(kp)

    forward = make_cnn_encoder(params, (N, Cin, H, W))        # weight prep hoisted here
    out = jax.block_until_ready(forward(x))

    # 16 -conv3-> 14 -pool-> 7 -conv3-> 5 -pool-> 2  => (N, 32, 2, 2)
    assert out.shape == (N, 32, 2, 2), out.shape
    assert bool(jnp.all(jnp.isfinite(out)))

    ref = _reference_forward(x, params)
    err = float(jnp.max(jnp.abs(out - ref)))
    assert err < 1e-1, f"max abs error vs reference: {err}"   # bf16 operands vs f32 ref
    print("KERNEL_OK")
</pallas_src>

<mosaic_0001>
module attributes {stable_mosaic.version = 11 : i64} {
  func.func @_fused_encoder_kernel(%arg0: i32, %arg1: memref<128x135xbf16, #tpu.memory_space<vmem>>, %arg2: memref<135x256xbf16, #tpu.memory_space<vmem>>, %arg3: memref<1x256xf32, #tpu.memory_space<vmem>>, %arg4: memref<256x768xbf16, #tpu.memory_space<vmem>>, %arg5: memref<1x128xf32, #tpu.memory_space<vmem>>, %arg6: memref<4x2x128xf32, #tpu.memory_space<vmem>>) attributes {dimension_semantics = [#tpu.dimension_semantics<parallel>], iteration_bounds = array<i64: 2>, scalar_prefetch = 0 : i64, scratch_operands = 0 : i64, tpu.core_type = #tpu.core_type<tc>, window_params = [{transform_indices = @transform_0, window_bounds = array<i64: 128, 135>}, {pipeline_mode = #tpu.pipeline_mode<synchronous>, transform_indices = @transform_1, window_bounds = array<i64: 135, 256>}, {pipeline_mode = #tpu.pipeline_mode<synchronous>, transform_indices = @transform_2, window_bounds = array<i64: 1, 256>}, {pipeline_mode = #tpu.pipeline_mode<synchronous>, transform_indices = @transform_3, window_bounds = array<i64: 256, 768>}, {pipeline_mode = #tpu.pipeline_mode<synchronous>, transform_indices = @transform_4, window_bounds = array<i64: 1, 128>}, {transform_indices = @transform_5, window_bounds = array<i64: 4, 2, 128>}]} {
    %c0 = arith.constant 0 : index
    %c0_0 = arith.constant 0 : index
    %0 = vector.load %arg1[%c0, %c0_0] : memref<128x135xbf16, #tpu.memory_space<vmem>>, vector<128x135xbf16>
    %c0_1 = arith.constant 0 : index
    %c0_2 = arith.constant 0 : index
    %1 = vector.load %arg2[%c0_1, %c0_2] : memref<135x256xbf16, #tpu.memory_space<vmem>>, vector<135x256xbf16>
    %cst = arith.constant dense<0.000000e+00> : vector<128x256xf32>
    %2 = tpu.matmul %0, %1, %cst {dimension_numbers = #tpu.dot_dimension_numbers<[1], [0], [0], [1], [0, 0, 1, 1], [], []>} : vector<128x135xbf16>, vector<135x256xbf16>, vector<128x256xf32> -> vector<128x256xf32>
    %3 = vector.extract_strided_slice %2 {offsets = [0, 0], sizes = [32, 256], strides = [1, 1]} : vector<128x256xf32> to vector<32x256xf32>
    %4 = vector.extract_strided_slice %2 {offsets = [32, 0], sizes = [32, 256], strides = [1, 1]} : vector<128x256xf32> to vector<32x256xf32>
    %5 = arith.maximumf %3, %4 : vector<32x256xf32>
    %6 = vector.extract_strided_slice %2 {offsets = [64, 0], sizes = [32, 256], strides = [1, 1]} : vector<128x256xf32> to vector<32x256xf32>
    %7 = vector.extract_strided_slice %2 {offsets = [96, 0], sizes = [32, 256], strides = [1, 1]} : vector<128x256xf32> to vector<32x256xf32>
    %8 = arith.maximumf %6, %7 : vector<32x256xf32>
    %9 = arith.maximumf %5, %8 : vector<32x256xf32>
    %c0_3 = arith.constant 0 : index
    %c0_4 = arith.constant 0 : index
    %10 = vector.load %arg3[%c0_3, %c0_4] : memref<1x256xf32, #tpu.memory_space<vmem>>, vector<1x256xf32>
    %11 = vector.broadcast %10 : vector<1x256xf32> to vector<32x256xf32>
    %12 = arith.addf %9, %11 : vector<32x256xf32>
    %cst_5 = arith.constant 0.000000e+00 : f32
    %13 = vector.broadcast %cst_5 : f32 to vector<32x256xf32>
    %14 = arith.maximumf %12, %13 : vector<32x256xf32>
    %15 = arith.truncf %14 : vector<32x256xf32> to vector<32x256xbf16>
    %c0_6 = arith.constant 0 : index
    %c0_7 = arith.constant 0 : index
    %16 = vector.load %arg4[%c0_6, %c0_7] : memref<256x768xbf16, #tpu.memory_space<vmem>>, vector<256x768xbf16>
    %cst_8 = arith.constant dense<0.000000e+00> : vector<32x768xf32>
    %17 = tpu.matmul %15, %16, %cst_8 {dimension_numbers = #tpu.dot_dimension_numbers<[1], [0], [0], [1], [0, 0, 1, 1], [], []>} : vector<32x256xbf16>, vector<256x768xbf16>, vector<32x768xf32> -> vector<32x768xf32>
    %18 = vector.extract_strided_slice %17 {offsets = [0, 0], sizes = [30, 256], strides = [1, 1]} : vector<32x768xf32> to vector<30x256xf32>
    %19 = vector.extract_strided_slice %17 {offsets = [1, 256], sizes = [30, 256], strides = [1, 1]} : vector<32x768xf32> to vector<30x256xf32>
    %20 = arith.addf %18, %19 : vector<30x256xf32>
    %21 = vector.extract_strided_slice %17 {offsets = [2, 512], sizes = [30, 256], strides = [1, 1]} : vector<32x768xf32> to vector<30x256xf32>
    %22 = arith.addf %20, %21 : vector<30x256xf32>
    %23 = vector.extract_strided_slice %22 {offsets = [0, 0], sizes = [30, 128], strides = [1, 1]} : vector<30x256xf32> to vector<30x128xf32>
    %24 = vector.extract_strided_slice %22 {offsets = [0, 128], sizes = [30, 128], strides = [1, 1]} : vector<30x256xf32> to vector<30x128xf32>
    %25 = arith.maximumf %23, %24 : vector<30x128xf32>
    %c0_9 = arith.constant 0 : index
    %c0_10 = arith.constant 0 : index
    %26 = vector.load %arg5[%c0_9, %c0_10] : memref<1x128xf32, #tpu.memory_space<vmem>>, vector<1x128xf32>
    %27 = vector.extract_strided_slice %25 {offsets = [0, 0], sizes = [1, 128], strides = [1, 1]} : vector<30x128xf32> to vector<1x128xf32>
    %28 = vector.extract_strided_slice %25 {offsets = [1, 0], sizes = [1, 128], strides = [1, 1]} : vector<30x128xf32> to vector<1x128xf32>
    %29 = arith.maximumf %27, %28 : vector<1x128xf32>
    %30 = vector.extract_strided_slice %25 {offsets = [2, 0], sizes = [1, 128], strides = [1, 1]} : vector<30x128xf32> to vector<1x128xf32>
    %31 = vector.extract_strided_slice %25 {offsets = [3, 0], sizes = [1, 128], strides = [1, 1]} : vector<30x128xf32> to vector<1x128xf32>
    %32 = arith.maximumf %30, %31 : vector<1x128xf32>
    %33 = tpu.concatenate %29, %32 in 0 : vector<1x128xf32>, vector<1x128xf32> -> vector<2x128xf32>
    %34 = vector.broadcast %26 : vector<1x128xf32> to vector<2x128xf32>
    %35 = arith.addf %33, %34 : vector<2x128xf32>
    %cst_11 = arith.constant 0.000000e+00 : f32
    %36 = vector.broadcast %cst_11 : f32 to vector<2x128xf32>
    %37 = arith.maximumf %35, %36 : vector<2x128xf32>
    %c0_12 = arith.constant 0 : index
    %c0_13 = arith.constant 0 : index
    %c0_14 = arith.constant 0 : index
    %38 = vector.load %arg6[%c0_12, %c0_13, %c0_14] : memref<4x2x128xf32, #tpu.memory_space<vmem>>, vector<1x2x128xf32>
    %39 = vector.shape_cast %38 : vector<1x2x128xf32> to vector<2x128xf32>
    %40 = vector.shape_cast %37 : vector<2x128xf32> to vector<1x2x128xf32>
    tpu.vector_store %arg6[%c0_12, %c0_13, %c0_14], %40 {strides = array<i32>} : memref<4x2x128xf32, #tpu.memory_space<vmem>>, vector<1x2x128xf32>,
    %41 = vector.extract_strided_slice %25 {offsets = [8, 0], sizes = [1, 128], strides = [1, 1]} : vector<30x128xf32> to vector<1x128xf32>
    %42 = vector.extract_strided_slice %25 {offsets = [9, 0], sizes = [1, 128], strides = [1, 1]} : vector<30x128xf32> to vector<1x128xf32>
    %43 = arith.maximumf %41, %42 : vector<1x128xf32>
    %44 = vector.extract_strided_slice %25 {offsets = [10, 0], sizes = [1, 128], strides = [1, 1]} : vector<30x128xf32> to vector<1x128xf32>
    %45 = vector.extract_strided_slice %25 {offsets = [11, 0], sizes = [1, 128], strides = [1, 1]} : vector<30x128xf32> to vector<1x128xf32>
    %46 = arith.maximumf %44, %45 : vector<1x128xf32>
    %47 = tpu.concatenate %43, %46 in 0 : vector<1x128xf32>, vector<1x128xf32> -> vector<2x128xf32>
    %48 = vector.broadcast %26 : vector<1x128xf32> to vector<2x128xf32>
    %49 = arith.addf %47, %48 : vector<2x128xf32>
    %cst_15 = arith.constant 0.000000e+00 : f32
    %50 = vector.broadcast %cst_15 : f32 to vector<2x128xf32>
    %51 = arith.maximumf %49, %50 : vector<2x128xf32>
    %c1 = arith.constant 1 : index
    %c0_16 = arith.constant 0 : index
    %c0_17 = arith.constant 0 : index
    %52 = vector.load %arg6[%c1, %c0_16, %c0_17] : memref<4x2x128xf32, #tpu.memory_space<vmem>>, vector<1x2x128xf32>
    %53 = vector.shape_cast %52 : vector<1x2x128xf32> to vector<2x128xf32>
    %54 = vector.shape_cast %51 : vector<2x128xf32> to vector<1x2x128xf32>
    tpu.vector_store %arg6[%c1, %c0_16, %c0_17], %54 {strides = array<i32>} : memref<4x2x128xf32, #tpu.memory_space<vmem>>, vector<1x2x128xf32>,
    %55 = vector.extract_strided_slice %25 {offsets = [16, 0], sizes = [1, 128], strides = [1, 1]} : vector<30x128xf32> to vector<1x128xf32>
    %56 = vector.extract_strided_slice %25 {offsets = [17, 0], sizes = [1, 128], strides = [1, 1]} : vector<30x128xf32> to vector<1x128xf32>
    %57 = arith.maximumf %55, %56 : vector<1x128xf32>
    %58 = vector.extract_strided_slice %25 {offsets = [18, 0], sizes = [1, 128], strides = [1, 1]} : vector<30x128xf32> to vector<1x128xf32>
    %59 = vector.extract_strided_slice %25 {offsets = [19, 0], sizes = [1, 128], strides = [1, 1]} : vector<30x128xf32> to vector<1x128xf32>
    %60 = arith.maximumf %58, %59 : vector<1x128xf32>
    %61 = tpu.concatenate %57, %60 in 0 : vector<1x128xf32>, vector<1x128xf32> -> vector<2x128xf32>
    %62 = vector.broadcast %26 : vector<1x128xf32> to vector<2x128xf32>
    %63 = arith.addf %61, %62 : vector<2x128xf32>
    %cst_18 = arith.constant 0.000000e+00 : f32
    %64 = vector.broadcast %cst_18 : f32 to vector<2x128xf32>
    %65 = arith.maximumf %63, %64 : vector<2x128xf32>
    %c2 = arith.constant 2 : index
    %c0_19 = arith.constant 0 : index
    %c0_20 = arith.constant 0 : index
    %66 = vector.load %arg6[%c2, %c0_19, %c0_20] : memref<4x2x128xf32, #tpu.memory_space<vmem>>, vector<1x2x128xf32>
    %67 = vector.shape_cast %66 : vector<1x2x128xf32> to vector<2x128xf32>
    %68 = vector.shape_cast %65 : vector<2x128xf32> to vector<1x2x128xf32>
    tpu.vector_store %arg6[%c2, %c0_19, %c0_20], %68 {strides = array<i32>} : memref<4x2x128xf32, #tpu.memory_space<vmem>>, vector<1x2x128xf32>,
    %69 = vector.extract_strided_slice %25 {offsets = [24, 0], sizes = [1, 128], strides = [1, 1]} : vector<30x128xf32> to vector<1x128xf32>
    %70 = vector.extract_strided_slice %25 {offsets = [25, 0], sizes = [1, 128], strides = [1, 1]} : vector<30x128xf32> to vector<1x128xf32>
    %71 = arith.maximumf %69, %70 : vector<1x128xf32>
    %72 = vector.extract_strided_slice %25 {offsets = [26, 0], sizes = [1, 128], strides = [1, 1]} : vector<30x128xf32> to vector<1x128xf32>
    %73 = vector.extract_strided_slice %25 {offsets = [27, 0], sizes = [1, 128], strides = [1, 1]} : vector<30x128xf32> to vector<1x128xf32>
    %74 = arith.maximumf %72, %73 : vector<1x128xf32>
    %75 = tpu.concatenate %71, %74 in 0 : vector<1x128xf32>, vector<1x128xf32> -> vector<2x128xf32>
    %76 = vector.broadcast %26 : vector<1x128xf32> to vector<2x128xf32>
    %77 = arith.addf %75, %76 : vector<2x128xf32>
    %cst_21 = arith.constant 0.000000e+00 : f32
    %78 = vector.broadcast %cst_21 : f32 to vector<2x128xf32>
    %79 = arith.maximumf %77, %78 : vector<2x128xf32>
    %c3 = arith.constant 3 : index
    %c0_22 = arith.constant 0 : index
    %c0_23 = arith.constant 0 : index
    %80 = vector.load %arg6[%c3, %c0_22, %c0_23] : memref<4x2x128xf32, #tpu.memory_space<vmem>>, vector<1x2x128xf32>
    %81 = vector.shape_cast %80 : vector<1x2x128xf32> to vector<2x128xf32>
    %82 = vector.shape_cast %79 : vector<2x128xf32> to vector<1x2x128xf32>
    tpu.vector_store %arg6[%c3, %c0_22, %c0_23], %82 {strides = array<i32>} : memref<4x2x128xf32, #tpu.memory_space<vmem>>, vector<1x2x128xf32>,
    return
  }
  func.func @transform_0(%arg0: i32) -> (i32, i32) {
    %c0_i32 = arith.constant 0 : i32
    %c0_i32_0 = arith.constant 0 : i32
    return %arg0, %c0_i32 : i32, i32
  }
  func.func @transform_1(%arg0: i32) -> (i32, i32) {
    %c0_i32 = arith.constant 0 : i32
    %c0_i32_0 = arith.constant 0 : i32
    %c0_i32_1 = arith.constant 0 : i32
    return %c0_i32, %c0_i32_0 : i32, i32
  }
  func.func @transform_2(%arg0: i32) -> (i32, i32) {
    %c0_i32 = arith.constant 0 : i32
    %c0_i32_0 = arith.constant 0 : i32
    %c0_i32_1 = arith.constant 0 : i32
    return %c0_i32, %c0_i32_0 : i32, i32
  }
  func.func @transform_3(%arg0: i32) -> (i32, i32) {
    %c0_i32 = arith.constant 0 : i32
    %c0_i32_0 = arith.constant 0 : i32
    %c0_i32_1 = arith.constant 0 : i32
    return %c0_i32, %c0_i32_0 : i32, i32
  }
  func.func @transform_4(%arg0: i32) -> (i32, i32) {
    %c0_i32 = arith.constant 0 : i32
    %c0_i32_0 = arith.constant 0 : i32
    %c0_i32_1 = arith.constant 0 : i32
    return %c0_i32, %c0_i32_0 : i32, i32
  }
  func.func @transform_5(%arg0: i32) -> (i32, i32, i32) {
    %c0_i32 = arith.constant 0 : i32
    %c0_i32_0 = arith.constant 0 : i32
    %c0_i32_1 = arith.constant 0 : i32
    return %arg0, %c0_i32, %c0_i32_0 : i32, i32, i32
  }
}

</mosaic_0001>

<bundles_post_ra>
// kernel: forward.1
= control target key start
LH: loop header
LB: loop body
LE: loop exit
PB: predicated region body
PF: predicated region fallthrough
CT: control target
= control target key end

     0   :  { %s1951_s18 = smov 0   ;;  %s2378_s0 = inlined_call_operand.vmem [shape: bf16[256,135], index: 0, kind: input, shape index: {}]   ;;  %s2379_s1 = inlined_call_operand.vmem [shape: bf16[135,256], index: 1, kind: input, shape index: {}]   ;;  %s2380_s2 = inlined_call_operand.vmem [shape: f32[1,256], index: 2, kind: input, shape index: {}]   ;;  %s2381_s3 = inlined_call_operand.vmem [shape: bf16[256,768], index: 3, kind: input, shape index: {}]   ;;  %s2382_s4 = inlined_call_operand.vmem [shape: f32[1,128], index: 4, kind: input, shape index: {}]   ;;  %s2383_s5 = inlined_call_operand.vmem [shape: f32[8,2,128], index: 5, kind: output, shape index: {}]  }
   0x1 LB: > { %s1554_s19 = sadd.s32 4294967295, %s1918_s18   ;;  %p1558_p0 = scmp.ge.s32.totalorder %s1918_s18, 1  ;;  %s1918_s18 = sphi %s1951_s18, %s15_s18  }
   0x2   : > { %p189_p1 = scmp.lt.s32.totalorder %s1918_s18, 3 }
   0x4   : > { %p190_p2 = pnand %p1558_p0, %p189_p1 }
   0x5   : > { %v1718_v0 = vld [vmem:[%s2379_s1 + $0x4] ss:$8 sps:$4 sm:$0xff] (!%p190_p2)   ;;  %v1720_v1 = vld [vmem:[%s2379_s1] ss:$8 sps:$4 sm:$0xff] (!%p190_p2)   ;;  %s1559_s24 = sshll.u32 (!%p190_p2), %s1554_s19, 4  ;;  %vm422_vm0 = vcmask (!%p190_p2), 56320  }
   0x6   : > { %193 = sbr.rel (%p190_p2) target bundleno = 622 (0x26e), region = 40  ;;  %457 = vmatprep.subr.bf16.mxu0 (!%p190_p2), %v1718_v0  ;;  %v1721_v2 = vld [vmem:[%s2379_s1 + $0x14] ss:$8 sps:$4 sm:$0xff] (!%p190_p2)   ;;  %v1723_v3 = vld [vmem:[%s2379_s1 + $0x10] ss:$8 sps:$4 sm:$0xff] (!%p190_p2)   ;;  %p219_p3 = scmp.lt.s32.totalorder (!%p190_p2), %s1559_s24, 31 }
   0x7   : > { %458 = vmatpush1.bf16.msra.mxu0 (!%p190_p2), %v1720_v1  ;;  %v1724_v4 = vld [vmem:[%s2379_s1 + $0x24] ss:$8 sps:$4 sm:$0xff] (!%p190_p2)   ;;  %v1726_v5 = vld [vmem:[%s2379_s1 + $0x20] ss:$8 sps:$4 sm:$0xff] (!%p190_p2)   ;;  %v1727_v6 = vld [vmem:[%s2379_s1 + $0x34] ss:$8 sps:$4 sm:$0xff] (!%p190_p2)  }
   0x8   : > { %459 = vmatprep.subr.bf16.mxu0 (!%p190_p2), %v1721_v2  ;;  %v1729_v7 = vld [vmem:[%s2379_s1 + $0x30] ss:$8 sps:$4 sm:$0xff] (!%p190_p2)   ;;  %v1730_v8 = vld [vmem:[%s2379_s1 + $0x44] ss:$8 sps:$4 sm:$0xff] (!%p190_p2)   ;;  %v1732_v10 = vld [vmem:[%s2379_s1 + $0x40] ss:$8 sps:$4 sm:$0xff] (!%p190_p2)  }
   0x9   : > { %v1733_v11 = vld [vmem:[%s2379_s1 + $0x54] ss:$8 sps:$4 sm:$0xff] (!%p190_p2)   ;;  %v1735_v12 = vld [vmem:[%s2379_s1 + $0x50] ss:$8 sps:$4 sm:$0xff] (!%p190_p2)   ;;  %vm447_vm1 = vcmask (!%p190_p2), 1042432   ;;  %v264_v14 = vld [vmem:[%s2379_s1 + $0x80] sm:$0xff] (!%p190_p2) }
   0xa   : > { %v1736_v13 = vld [vmem:[%s2379_s1 + $0x64] ss:$8 sps:$4 sm:$0xff] (!%p190_p2)   ;;  %vm448_vm2 = vcmask (!%p190_p2), 1043456   ;;  %v1920_v15 = vmov (!%p190_p2), 65535   ;;  %v1770_v18 = vld [vmem:[%s2381_s3] ss:$24 sps:$4 sm:$0xff] (!%p190_p2)   ;;  %v1597_v21 = vcombine.high (!%p190_p2), %v264_v14, %v264_v14  ;;  %v1596_v24 = vcombine.low (!%p190_p2), %v264_v14, %v264_v14 }
   0xb   : > { %460 = vmatpush1.bf16.msra.mxu0 (!%p190_p2), %v1723_v3  ;;  %v449_v16 = vsel (!%p190_p2), %vm447_vm1, 4294967295, %v1920_v15  ;;  %v1768_v17 = vld [vmem:[%s2381_s3 + $0x4] ss:$24 sps:$4 sm:$0xff] (!%p190_p2)   ;;  %v1738_v19 = vld [vmem:[%s2379_s1 + $0x60] ss:$8 sps:$4 sm:$0xff] (!%p190_p2)   ;;  %vm1369_vm3 = vcmask (!%p190_p2), 1046528  }
   0xc   : > { %461 = vmatprep.subr.bf16.mxu0 (!%p190_p2), %v1724_v4  ;;  %v1739_v20 = vld [vmem:[%s2379_s1 + $0x74] ss:$8 sps:$4 sm:$0xff] (!%p190_p2)   ;;  %1202 = vmatprep.subr.bf16.mxu1 (!%p190_p2), %v1768_v17  ;;  %v1741_v22 = vld [vmem:[%s2379_s1 + $0x70] ss:$8 sps:$4 sm:$0xff] (!%p190_p2)   ;;  %v450_v23 = vsel (!%p190_p2), %vm448_vm2, %v449_v16, 0  ;;  %vm1408_vm4 = vcmask (!%p190_p2), 1045504  }
   0xd   : > { %s2385_s24 = smov (!%p219_p3, %s1559_s24), 31  ;;  %1203 = vmatpush1.bf16.msra.mxu1 %v1770_v18  ;;  %v455_v25 = vand.u32 %v1597_v21, %v450_v23  ;;  %v1773_v26 = vld [vmem:[%s2381_s3 + $0xc] ss:$24 sps:$4 sm:$0xff]   ;;  %v452_v27 = vand.u32 %v1596_v24, %v450_v23  ;;  %v1771_v30 = vld [vmem:[%s2381_s3 + $0x8] ss:$24 sps:$4 sm:$0xff]   ;;  %vm1451_vm5 = vcmask 1040384  }
   0xe   : > { %s1708_s10 = sshll.u32 %s2385_s24, 3  ;;  %v1774_v44 = vld [vmem:[%s2381_s3 + $0x34] ss:$24 sps:$4 sm:$0xff]   ;;  %v1776_v45 = vld [vmem:[%s2381_s3 + $0x30] ss:$24 sps:$4 sm:$0xff]   ;;  %s1562_s24 = sshll.u32 %s1554_s19, 2 }
   0xf   : > { %s1985_s13 = scalar_lea.vmem %s2378_s0, %s1708_s10  ;;  %462 = vmatpush1.bf16.msra.mxu0 %v1726_v5  ;;  %v1779_v46 = vld [vmem:[%s2381_s3 + $0x3c] ss:$24 sps:$4 sm:$0xff]   ;;  %1204 = vmatprep.subr.bf16.mxu1 %v1774_v44  ;;  %v1777_v47 = vld [vmem:[%s2381_s3 + $0x38] ss:$24 sps:$4 sm:$0xff]   ;;  %v1783_v50 = vld [vmem:[%s2381_s3 + $0x68] ss:$24 sps:$4 sm:$0xff]  }
  0x10   : > { %463 = vmatprep.subr.bf16.mxu0 %v1727_v6  ;;  %v1746_v9 = vld [vmem:[%s1985_s13 + $0x4] ss:$8 sps:$4 sm:$0xff]   ;;  %v1744_v28 = vld [vmem:[%s1985_s13] ss:$8 sps:$4 sm:$0xff]   ;;  %v1747_v29 = vld [vmem:[%s1985_s13 + $0x14] ss:$8 sps:$4 sm:$0xff]  }
  0x11   : > { %1598 = vmatprep.mubr.msk.bf16.mxu0 %vm422_vm0, %v1746_v9  ;;  %v1749_v31 = vld [vmem:[%s1985_s13 + $0x10] ss:$8 sps:$4 sm:$0xff]   ;;  %v1750_v32 = vld [vmem:[%s1985_s13 + $0x24] ss:$8 sps:$4 sm:$0xff]   ;;  %v1752_v33 = vld [vmem:[%s1985_s13 + $0x20] ss:$8 sps:$4 sm:$0xff]   ;;  %1205 = vmatpush1.bf16.msra.mxu1 %v1776_v45 }
  0x12   : > { %v1753_v34 = vld [vmem:[%s1985_s13 + $0x34] ss:$8 sps:$4 sm:$0xff]   ;;  %v1755_v35 = vld [vmem:[%s1985_s13 + $0x30] ss:$8 sps:$4 sm:$0xff]   ;;  %v1756_v36 = vld [vmem:[%s1985_s13 + $0x44] ss:$8 sps:$4 sm:$0xff]  }
  0x13   : > { %464 = vmatpush1.bf16.msra.mxu0 %v1729_v7  ;;  %v1758_v37 = vld [vmem:[%s1985_s13 + $0x40] ss:$8 sps:$4 sm:$0xff]   ;;  %v1759_v38 = vld [vmem:[%s1985_s13 + $0x54] ss:$8 sps:$4 sm:$0xff]   ;;  %v1761_v39 = vld [vmem:[%s1985_s13 + $0x50] ss:$8 sps:$4 sm:$0xff]  }
  0x14   : > { %465 = vmatprep.subr.bf16.mxu0 %v1730_v8  ;;  %v1762_v40 = vld [vmem:[%s1985_s13 + $0x64] ss:$8 sps:$4 sm:$0xff]   ;;  %v1764_v41 = vld [vmem:[%s1985_s13 + $0x60] ss:$8 sps:$4 sm:$0xff]   ;;  %v1765_v42 = vld [vmem:[%s1985_s13 + $0x74] ss:$8 sps:$4 sm:$0xff]  }
  0x15   : > { %v1767_v43 = vld [vmem:[%s1985_s13 + $0x70] ss:$8 sps:$4 sm:$0xff]   ;;  %v1780_v48 = vld [vmem:[%s2381_s3 + $0x64] ss:$24 sps:$4 sm:$0xff]   ;;  %v1786_v52 = vld [vmem:[%s2381_s3 + $0x94] ss:$24 sps:$4 sm:$0xff]  }
  0x16   : > { %v1782_v49 = vld [vmem:[%s2381_s3 + $0x60] ss:$24 sps:$4 sm:$0xff]   ;;  %v1785_v51 = vld [vmem:[%s2381_s3 + $0x6c] ss:$24 sps:$4 sm:$0xff]   ;;  %1206 = vmatprep.subr.bf16.mxu1 %v1780_v48  ;;  %v1788_v53 = vld [vmem:[%s2381_s3 + $0x90] ss:$24 sps:$4 sm:$0xff]  }
  0x17   : > { %466 = vmatpush1.bf16.msra.mxu0 %v1732_v10  ;;  %1207 = vmatpush1.bf16.msra.mxu1 %v1782_v49  ;;  %v1791_v54 = vld [vmem:[%s2381_s3 + $0x9c] ss:$24 sps:$4 sm:$0xff]   ;;  %v1789_v55 = vld [vmem:[%s2381_s3 + $0x98] ss:$24 sps:$4 sm:$0xff]   ;;  %v1795_v58 = vld [vmem:[%s2381_s3 + $0xc8] ss:$24 sps:$4 sm:$0xff]  }
  0x18   : > { %467 = vmatprep.subr.bf16.mxu0 %v1733_v11  ;;  %1208 = vmatprep.subr.bf16.mxu1 %v1786_v52  ;;  %v1792_v56 = vld [vmem:[%s2381_s3 + $0xc4] ss:$24 sps:$4 sm:$0xff]   ;;  %v1794_v57 = vld [vmem:[%s2381_s3 + $0xc0] ss:$24 sps:$4 sm:$0xff]   ;;  %v1798_v60 = vld [vmem:[%s2381_s3 + $0xf4] ss:$24 sps:$4 sm:$0xff]  }
  0x19   : > { %v1797_v59 = vld [vmem:[%s2381_s3 + $0xcc] ss:$24 sps:$4 sm:$0xff]   ;;  %v1800_v61 = vld [vmem:[%s2381_s3 + $0xf0] ss:$24 sps:$4 sm:$0xff]   ;;  %v1803_v62 = vld [vmem:[%s2381_s3 + $0xfc] ss:$24 sps:$4 sm:$0xff]  }
  0x1a   : > { %v1801_v63 = vld [vmem:[%s2381_s3 + $0xf8] ss:$24 sps:$4 sm:$0xff]   ;;  %v1804_v0 = vld [vmem:[%s2381_s3 + $0x124] ss:$24 sps:$4 sm:$0xff]   ;;  %v1807_v2 = vld [vmem:[%s2381_s3 + $0x128] ss:$24 sps:$4 sm:$0xff]  }
  0x1b   : > { %468 = vmatpush1.bf16.msra.mxu0 %v1735_v12  ;;  %1209 = vmatpush1.bf16.msra.mxu1 %v1788_v53  ;;  %v1806_v1 = vld [vmem:[%s2381_s3 + $0x120] ss:$24 sps:$4 sm:$0xff]   ;;  %v1809_v3 = vld [vmem:[%s2381_s3 + $0x12c] ss:$24 sps:$4 sm:$0xff]   ;;  %v1812_v5 = vld [vmem:[%s2381_s3 + $0x150] ss:$24 sps:$4 sm:$0xff]  }
  0x1c   : > { %469 = vmatprep.subr.bf16.mxu0 %v1736_v13  ;;  %1210 = vmatprep.subr.bf16.mxu1 %v1792_v56  ;;  %v1810_v4 = vld [vmem:[%s2381_s3 + $0x154] ss:$24 sps:$4 sm:$0xff]   ;;  %v1813_v7 = vld [vmem:[%s2381_s3 + $0x158] ss:$24 sps:$4 sm:$0xff]   ;;  %v1816_v8 = vld [vmem:[%s2381_s3 + $0x184] ss:$24 sps:$4 sm:$0xff]  }
  0x1d   : > { %v1815_v6 = vld [vmem:[%s2381_s3 + $0x15c] ss:$24 sps:$4 sm:$0xff]   ;;  %v1818_v9 = vld [vmem:[%s2381_s3 + $0x180] ss:$24 sps:$4 sm:$0xff]   ;;  %v1821_v11 = vld [vmem:[%s2381_s3 + $0x18c] ss:$24 sps:$4 sm:$0xff]  }
  0x1e   : > { %v1819_v10 = vld [vmem:[%s2381_s3 + $0x188] ss:$24 sps:$4 sm:$0xff]   ;;  %v1822_v12 = vld [vmem:[%s2381_s3 + $0x1b4] ss:$24 sps:$4 sm:$0xff]   ;;  %v1825_v15 = vld [vmem:[%s2381_s3 + $0x1b8] ss:$24 sps:$4 sm:$0xff]  }
  0x1f   : > { %470 = vmatpush1.bf16.msra.mxu0 %v1738_v19  ;;  %1211 = vmatpush1.bf16.msra.mxu1 %v1794_v57  ;;  %v1824_v13 = vld [vmem:[%s2381_s3 + $0x1b0] ss:$24 sps:$4 sm:$0xff]   ;;  %v1827_v14 = vld [vmem:[%s2381_s3 + $0x1bc] ss:$24 sps:$4 sm:$0xff]   ;;  %v1830_v17 = vld [vmem:[%s2381_s3 + $0x1e0] ss:$24 sps:$4 sm:$0xff]  }
  0x20   : > { %471 = vmatprep.subr.bf16.mxu0 %v1739_v20  ;;  %1212 = vmatprep.subr.bf16.mxu1 %v1798_v60  ;;  %v1828_v16 = vld [vmem:[%s2381_s3 + $0x1e4] ss:$24 sps:$4 sm:$0xff]   ;;  %v1831_v18 = vld [vmem:[%s2381_s3 + $0x1e8] ss:$24 sps:$4 sm:$0xff]   ;;  %v1834_v20 = vld [vmem:[%s2381_s3 + $0x214] ss:$24 sps:$4 sm:$0xff]  }
  0x21   : > { %v1833_v19 = vld [vmem:[%s2381_s3 + $0x1ec] ss:$24 sps:$4 sm:$0xff]   ;;  %v1836_v21 = vld [vmem:[%s2381_s3 + $0x210] ss:$24 sps:$4 sm:$0xff]   ;;  %p226_p4 = scmp.lt.s32.totalorder %s1562_s24, 7 }
  0x22   : > { %v1837_v23 = vld [vmem:[%s2381_s3 + $0x218] ss:$24 sps:$4 sm:$0xff]   ;;  %v1840_v24 = vld [vmem:[%s2381_s3 + $0x244] ss:$24 sps:$4 sm:$0xff]  }
  0x23   : > { %472 = vmatpush1.bf16.msra.mxu0 %v1741_v22  ;;  %1213 = vmatpush1.bf16.msra.mxu1 %v1800_v61  ;;  %v1839_v22 = vld [vmem:[%s2381_s3 + $0x21c] ss:$24 sps:$4 sm:$0xff]   ;;  %s2387_s24 = smov (!%p226_p4, %s1562_s24), 7 }
  0x24   : > { %473 = vmatprep.subr.bf16.mxu0 %v455_v25  ;;  %1214 = vmatprep.subr.bf16.mxu1 %v1804_v0  ;;  %v1842_v25 = vld [vmem:[%s2381_s3 + $0x240] ss:$24 sps:$4 sm:$0xff]   ;;  %s1563_s26 = sshll.u32 %s2387_s24, 1 }
  0x25   : > { %s229_s29 = scalar_lea.vmem %s2383_s5, %s1563_s26 }
  0x27   : > { %474 = vmatpush1.bf16.msra.mxu0 %v452_v27  ;;  %1215 = vmatpush1.bf16.msra.mxu1 %v1806_v1  ;;  %v1845_v27 = vld [vmem:[%s2381_s3 + $0x24c] ss:$24 sps:$4 sm:$0xff]  }
  0x28   : > { %1255 = vmatprep.subr.bf16.mxu0 %v1773_v26  ;;  %1216 = vmatprep.subr.bf16.mxu1 %v1810_v4  ;;  %v1843_v26 = vld [vmem:[%s2381_s3 + $0x248] ss:$24 sps:$4 sm:$0xff]  }
  0x2a   : > { %490 = vmatmul.mubr.bf16.vlgmr.msra.gmra.mrb[0].mxu0 %v1744_v28  ;;  %v1846_v28 = vld [vmem:[%s2381_s3 + $0x274] ss:$24 sps:$4 sm:$0xff]  }
  0x2b   : > { %1599 = vmatprep.mubr.msk.bf16.mxu0 %vm422_vm0, %v1747_v29  ;;  %1256 = vmatpush1.bf16.msra.mxu0 %v1771_v30  ;;  %v1848_v29 = vld [vmem:[%s2381_s3 + $0x270] ss:$24 sps:$4 sm:$0xff]   ;;  %v1851_v30 = vld [vmem:[%s2381_s3 + $0x27c] ss:$24 sps:$4 sm:$0xff]  }
  0x2c   : > { %1257 = vmatprep.subr.bf16.mxu0 %v1779_v46  ;;  %1217 = vmatpush1.bf16.msra.mxu1 %v1812_v5  ;;  %v596_v5 = vlaneseq }
  0x2d   : > { %1218 = vmatprep.subr.bf16.mxu1 %v1816_v8 }
  0x2e   : > { %v597_v8 = vshrl.u32 %v596_v5, 7  ;;  %v1881_v5 = vld [vmem:[%s2381_s3 + $0x104] ss:$24 sps:$4 sm:$0xff]  }
  0x2f   : > { %1258 = vmatpush1.bf16.msra.mxu0 %v1777_v47 }
  0x30   : > { %1259 = vmatprep.subr.bf16.mxu0 %v1785_v51  ;;  %1219 = vmatpush1.bf16.msra.mxu1 %v1818_v9 }
  0x31   : > { %1220 = vmatprep.subr.bf16.mxu1 %v1822_v12  ;;  %v594_v12 = vld [vmem:[%s2380_s2] sm:$0x3] }
  0x32   : > { %500 = vmatmul.mubr.bf16.gmra.mrb[4].mxu0 %v1749_v31  ;;  %v1849_v31 = vld [vmem:[%s2381_s3 + $0x278] ss:$24 sps:$4 sm:$0xff]  }
  0x33   : > { %1600 = vmatprep.mubr.msk.bf16.mxu0 %vm422_vm0, %v1750_v32  ;;  %1260 = vmatpush1.bf16.msra.mxu0 %v1783_v50  ;;  %v1852_v32 = vld [vmem:[%s2381_s3 + $0x2a4] ss:$24 sps:$4 sm:$0xff]  }
  0x34   : > { %1261 = vmatprep.subr.bf16.mxu0 %v1791_v54  ;;  %1221 = vmatpush1.bf16.msra.mxu1 %v1824_v13  ;;  %v602_v13 = vsub.s32 1, %v597_v8 }
  0x35   : > { %1222 = vmatprep.subr.bf16.mxu1 %v1828_v16 }
  0x37   : > { %1262 = vmatpush1.bf16.msra.mxu0 %v1789_v55 }
  0x38   : > { %1263 = vmatprep.subr.bf16.mxu0 %v1797_v59  ;;  %1223 = vmatpush1.bf16.msra.mxu1 %v1830_v17 }
  0x39   : > { %1224 = vmatprep.subr.bf16.mxu1 %v1834_v20 }
  0x3a   : > { %510 = vmatmul.mubr.bf16.gmra.mrb[8].mxu0 %v1752_v33  ;;  %v1854_v33 = vld [vmem:[%s2381_s3 + $0x2a0] ss:$24 sps:$4 sm:$0xff]  }
  0x3b   : > { %1601 = vmatprep.mubr.msk.bf16.mxu0 %vm422_vm0, %v1753_v34  ;;  %1264 = vmatpush1.bf16.msra.mxu0 %v1795_v58  ;;  %v1857_v34 = vld [vmem:[%s2381_s3 + $0x2ac] ss:$24 sps:$4 sm:$0xff]  }
  0x3c   : > { %1265 = vmatprep.subr.bf16.mxu0 %v1803_v62  ;;  %1225 = vmatpush1.bf16.msra.mxu1 %v1836_v21 }
  0x3d   : > { %1226 = vmatprep.subr.bf16.mxu1 %v1840_v24 }
  0x3f   : > { %1266 = vmatpush1.bf16.msra.mxu0 %v1801_v63 }
  0x40   : > { %1267 = vmatprep.subr.bf16.mxu0 %v1809_v3  ;;  %1227 = vmatpush1.bf16.msra.mxu1 %v1842_v25 }
  0x41   : > { %1228 = vmatprep.subr.bf16.mxu1 %v1846_v28 }
  0x42   : > { %520 = vmatmul.mubr.bf16.gmra.mrb[12].mxu0 %v1755_v35  ;;  %v1855_v35 = vld [vmem:[%s2381_s3 + $0x2a8] ss:$24 sps:$4 sm:$0xff]  }
  0x43   : > { %1602 = vmatprep.mubr.msk.bf16.mxu0 %vm422_vm0, %v1756_v36  ;;  %1268 = vmatpush1.bf16.msra.mxu0 %v1807_v2  ;;  %v1858_v36 = vld [vmem:[%s2381_s3 + $0x2d4] ss:$24 sps:$4 sm:$0xff]  }
  0x44   : > { %1269 = vmatprep.subr.bf16.mxu0 %v1815_v6  ;;  %1229 = vmatpush1.bf16.msra.mxu1 %v1848_v29 }
  0x45   : > { %1230 = vmatprep.subr.bf16.mxu1 %v1852_v32 }
  0x47   : > { %1270 = vmatpush1.bf16.msra.mxu0 %v1813_v7 }
  0x48   : > { %1271 = vmatprep.subr.bf16.mxu0 %v1821_v11  ;;  %1231 = vmatpush1.bf16.msra.mxu1 %v1854_v33  ;;  %v598_v11 = vsub.s32 0, %v597_v8  ;;  %v1882_v8 = vld [vmem:[%s2381_s3 + $0x130] ss:$24 sps:$4 sm:$0xff]  }
  0x49   : > { %1232 = vmatprep.subr.bf16.mxu1 %v1858_v36 }
  0x4a   : > { %530 = vmatmul.mubr.bf16.gmra.mrb[16].mxu0 %v1758_v37  ;;  %v1860_v37 = vld [vmem:[%s2381_s3 + $0x2d0] ss:$24 sps:$4 sm:$0xff]   ;;  %v599_v16 = vrot.slane %v594_v12, %v598_v11  ;;  %v1890_v11 = vld [vmem:[%s2381_s3 + $0x194] ss:$24 sps:$4 sm:$0xff]  }
  0x4b   : > { %1603 = vmatprep.mubr.msk.bf16.mxu0 %vm422_vm0, %v1759_v38  ;;  %1272 = vmatpush1.bf16.msra.mxu0 %v1819_v10  ;;  %v1863_v38 = vld [vmem:[%s2381_s3 + $0x2dc] ss:$24 sps:$4 sm:$0xff]  }
  0x4c   : > { %1273 = vmatprep.subr.bf16.mxu0 %v1827_v14  ;;  %1233 = vmatpush1.bf16.msra.mxu1 %v1860_v37 }
  0x4f   : > { %1274 = vmatpush1.bf16.msra.mxu0 %v1825_v15 }
  0x50   : > { %1275 = vmatprep.subr.bf16.mxu0 %v1833_v19  ;;  %v603_v19 = vrot.slane %v594_v12, %v602_v13  ;;  %v1888_v12 = vld [vmem:[%s2381_s3 + $0x190] ss:$24 sps:$4 sm:$0xff]   ;;  %v1893_v13 = vld [vmem:[%s2381_s3 + $0x1c4] ss:$24 sps:$4 sm:$0xff]  }
  0x52   : > { %540 = vmatmul.mubr.bf16.gmra.mrb[20].mxu0 %v1761_v39  ;;  %v1861_v39 = vld [vmem:[%s2381_s3 + $0x2d8] ss:$24 sps:$4 sm:$0xff]  }
  0x53   : > { %1604 = vmatprep.mubr.msk.bf16.mxu0 %vm422_vm0, %v1762_v40  ;;  %1276 = vmatpush1.bf16.msra.mxu0 %v1831_v18  ;;  %v1866_v40 = vld [vmem:[%s2381_s3 + $0x14] ss:$24 sps:$4 sm:$0xff]  }
  0x54   : > { %1277 = vmatprep.subr.bf16.mxu0 %v1839_v22  ;;  %1308 = vmatprep.subr.bf16.mxu1 %v1866_v40 }
  0x57   : > { %1278 = vmatpush1.bf16.msra.mxu0 %v1837_v23 }
  0x58   : > { %1279 = vmatprep.subr.bf16.mxu0 %v1845_v27 }
  0x5a   : > { %550 = vmatmul.mubr.bf16.gmra.mrb[24].mxu0 %v1764_v41 }
  0x5b   : > { %1605 = vmatprep.mubr.msk.bf16.mxu0 %vm422_vm0, %v1765_v42  ;;  %1280 = vmatpush1.bf16.msra.mxu0 %v1843_v26 }
  0x5c   : > { %1281 = vmatprep.subr.bf16.mxu0 %v1851_v30 }
  0x5f   : > { %1282 = vmatpush1.bf16.msra.mxu0 %v1849_v31 }
  0x60   : > { %1283 = vmatprep.subr.bf16.mxu0 %v1857_v34 }
  0x62   : > { %560 = vmatmul.mubr.bf16.gmra.mrb[28].mxu0 %v1767_v43 }
  0x63   : > { %1284 = vmatpush1.bf16.msra.mxu0 %v1855_v35 }
  0x64   : > { %1285 = vmatprep.subr.bf16.mxu0 %v1863_v38 }
  0x67   : > { %1286 = vmatpush1.bf16.msra.mxu0 %v1861_v39 }
  0xfd   : > { %v491_v41 = vpop.f32.mrb[0].mxu0 }
  0xfe   : > { %v493_v42 = vpop.f32.mrb[1].mxu0 }
  0xff   : > { %v495_v43 = vpop.f32.mrb[2].mxu0 }
 0x100   : > { %v497_v44 = vpop.f32.mrb[3].mxu0 }
 0x105   : > { %v501_v45 = vpop.f32.mrb[4].mxu0 }
 0x106   : > { %v2236_v46 = vpop.f32.mrb[5].mxu0 }
 0x107   : > { %v2238_v47 = vpop.f32.mrb[6].mxu0 }
 0x108   : > { %v2240_v48 = vpop.f32.mrb[7].mxu0 }
 0x10d   : > { %v511_v49 = vpop.f32.mrb[8].mxu0 }
 0x10e   : > { %v570_v50 = vmax.f32 %v491_v41, %v511_v49  ;;  %v513_v51 = vpop.f32.mrb[9].mxu0 }
 0x10f   : > { %v571_v52 = vmax.f32 %v493_v42, %v513_v51  ;;  %v515_v53 = vpop.f32.mrb[10].mxu0  ;;  %v1869_v51 = vld [vmem:[%s2381_s3 + $0x44] ss:$24 sps:$4 sm:$0xff]  }
 0x110   : > { %v572_v54 = vmax.f32 %v495_v43, %v515_v53  ;;  %v517_v55 = vpop.f32.mrb[11].mxu0 }
 0x111   : > { %v573_v56 = vmax.f32 %v497_v44, %v517_v55 }
 0x115   : > { %v521_v57 = vpop.f32.mrb[12].mxu0 }
 0x116   : > { %v574_v58 = vmax.f32 %v501_v45, %v521_v57  ;;  %v523_v59 = vpop.f32.mrb[13].mxu0 }
 0x117   : > { %v575_v60 = vmax.f32 %v2236_v46, %v523_v59  ;;  %v525_v61 = vpop.f32.mrb[14].mxu0  ;;  %v1872_v59 = vld [vmem:[%s2381_s3 + $0x74] ss:$24 sps:$4 sm:$0xff]  }
 0x118   : > { %v576_v62 = vmax.f32 %v2238_v47, %v525_v61  ;;  %v527_v63 = vpop.f32.mrb[15].mxu0 }
 0x119   : > { %v577_v0 = vmax.f32 %v2240_v48, %v527_v63  ;;  %v1864_v48 = vld [vmem:[%s2381_s3 + $0x10] ss:$24 sps:$4 sm:$0xff]  }
 0x11d   : > { %v531_v1 = vpop.f32.mrb[16].mxu0 }
 0x11e   : > { %v533_v2 = vpop.f32.mrb[17].mxu0 }
 0x11f   : > { %v535_v3 = vpop.f32.mrb[18].mxu0 }
 0x120   : > { %v537_v4 = vpop.f32.mrb[19].mxu0 }
 0x125   : > { %v541_v6 = vpop.f32.mrb[20].mxu0 }
 0x126   : > { %v543_v7 = vpop.f32.mrb[21].mxu0 }
 0x127   : > { %v545_v9 = vpop.f32.mrb[22].mxu0 }
 0x128   : > { %v547_v10 = vpop.f32.mrb[23].mxu0 }
 0x12d   : > { %v551_v14 = vpop.f32.mrb[24].mxu0 }
 0x12e   : > { %v578_v15 = vmax.f32 %v531_v1, %v551_v14  ;;  %v553_v17 = vpop.f32.mrb[25].mxu0  ;;  %v1875_v1 = vld [vmem:[%s2381_s3 + $0xa4] ss:$24 sps:$4 sm:$0xff]   ;;  %v1891_v14 = vld [vmem:[%s2381_s3 + $0x1c0] ss:$24 sps:$4 sm:$0xff]  }
 0x12f   : > { %v579_v18 = vmax.f32 %v533_v2, %v553_v17  ;;  %v555_v20 = vpop.f32.mrb[26].mxu0  ;;  %v1873_v2 = vld [vmem:[%s2381_s3 + $0xa0] ss:$24 sps:$4 sm:$0xff]   ;;  %v1899_v17 = vld [vmem:[%s2381_s3 + $0x224] ss:$24 sps:$4 sm:$0xff]  }
 0x130   : > { %v586_v21 = vmax.f32 %v570_v50, %v578_v15  ;;  %v580_v22 = vmax.f32 %v535_v3, %v555_v20  ;;  %v557_v23 = vpop.f32.mrb[27].mxu0  ;;  %v1878_v3 = vld [vmem:[%s2381_s3 + $0xd4] ss:$24 sps:$4 sm:$0xff]   ;;  %v1900_v20 = vld [vmem:[%s2381_s3 + $0x250] ss:$24 sps:$4 sm:$0xff]  }
 0x131   : > { %v587_v24 = vmax.f32 %v571_v52, %v579_v18  ;;  %v581_v25 = vmax.f32 %v537_v4, %v557_v23  ;;  %v1876_v4 = vld [vmem:[%s2381_s3 + $0xd0] ss:$24 sps:$4 sm:$0xff]   ;;  %v1896_v15 = vld [vmem:[%s2381_s3 + $0x1f4] ss:$24 sps:$4 sm:$0xff]   ;;  %v1897_v18 = vld [vmem:[%s2381_s3 + $0x220] ss:$24 sps:$4 sm:$0xff]  }
 0x132   : > { %v606_v26 = vadd.f32 %v599_v16, %v586_v21  ;;  %v588_v27 = vmax.f32 %v572_v54, %v580_v22  ;;  %v1905_v21 = vld [vmem:[%s2381_s3 + $0x284] ss:$24 sps:$4 sm:$0xff]   ;;  %v1903_v22 = vld [vmem:[%s2381_s3 + $0x280] ss:$24 sps:$4 sm:$0xff]   ;;  %v1908_v23 = vld [vmem:[%s2381_s3 + $0x2b4] ss:$24 sps:$4 sm:$0xff]  }
 0x133   : > { %v607_v28 = vadd.f32 %v603_v19, %v587_v24  ;;  %v589_v29 = vmax.f32 %v573_v56, %v581_v25  ;;  %v1867_v56 = vld [vmem:[%s2381_s3 + $0x40] ss:$24 sps:$4 sm:$0xff]   ;;  %v1906_v24 = vld [vmem:[%s2381_s3 + $0x2b0] ss:$24 sps:$4 sm:$0xff]   ;;  %v1911_v25 = vld [vmem:[%s2381_s3 + $0x2e4] ss:$24 sps:$4 sm:$0xff]  }
 0x134   : > { %v608_v30 = vadd.f32 %v599_v16, %v588_v27  ;;  %v614_v33 = vmax.f32 %v606_v26, 0.0  ;;  %v1909_v26 = vld [vmem:[%s2381_s3 + $0x2e0] ss:$24 sps:$4 sm:$0xff]  }
 0x135   : > { %v609_v31 = vadd.f32 %v603_v19, %v589_v29  ;;  %v561_v32 = vpop.f32.mrb[28].mxu0  ;;  %v615_v37 = vmax.f32 %v607_v28, 0.0 }
 0x136   : > { %v616_v34 = vmax.f32 %v608_v30, 0.0  ;;  %v582_v35 = vmax.f32 %v541_v6, %v561_v32  ;;  %v563_v36 = vpop.f32.mrb[29].mxu0  ;;  %v1879_v6 = vld [vmem:[%s2381_s3 + $0x100] ss:$24 sps:$4 sm:$0xff]  }
 0x137   : > { %v617_v38 = vmax.f32 %v609_v31, 0.0  ;;  %v583_v39 = vmax.f32 %v543_v7, %v563_v36  ;;  %v565_v40 = vpop.f32.mrb[30].mxu0  ;;  %v1884_v7 = vld [vmem:[%s2381_s3 + $0x134] ss:$24 sps:$4 sm:$0xff]  }
 0x138   : > { %v590_v41 = vmax.f32 %v574_v58, %v582_v35  ;;  %v584_v42 = vmax.f32 %v545_v9, %v565_v40  ;;  %v567_v43 = vpop.f32.mrb[31].mxu0  ;;  %v2248_v44 = vpack.c.bf16 %v616_v34, %v614_v33  ;;  %v1887_v9 = vld [vmem:[%s2381_s3 + $0x164] ss:$24 sps:$4 sm:$0xff]  }
 0x139   : > { %v591_v45 = vmax.f32 %v575_v60, %v583_v39  ;;  %v585_v46 = vmax.f32 %v547_v10, %v567_v43  ;;  %v623_v47 = vpack.c.bf16 %v617_v38, %v615_v37  ;;  %v1885_v10 = vld [vmem:[%s2381_s3 + $0x160] ss:$24 sps:$4 sm:$0xff]  }
 0x13a   : > { %v610_v49 = vadd.f32 %v599_v16, %v590_v41  ;;  %v592_v50 = vmax.f32 %v576_v62, %v584_v42 }
 0x13b   : > { %v611_v52 = vadd.f32 %v603_v19, %v591_v45  ;;  %v593_v53 = vmax.f32 %v577_v0, %v585_v46  ;;  %1234 = vmatprep.mubr.bf16.mxu1 %v623_v47  ;;  %1287 = vmatprep.mubr.bf16.mxu0 %v623_v47  ;;  %v1870_v0 = vld [vmem:[%s2381_s3 + $0x70] ss:$24 sps:$4 sm:$0xff]  }
 0x13c   : > { %v612_v54 = vadd.f32 %v599_v16, %v592_v50  ;;  %1235 = vmatmul.mubr.bf16.vlgmr.msra.gmra.mrb[0].mxu1 %v2248_v44  ;;  %1288 = vmatmul.mubr.bf16.vlgmr.msra.gmra.mrb[32].mxu0 %v2248_v44  ;;  %v618_v57 = vmax.f32 %v610_v49, 0.0  ;;  %v1894_v16 = vld [vmem:[%s2381_s3 + $0x1f0] ss:$24 sps:$4 sm:$0xff]  }
 0x13d   : > { %v613_v55 = vadd.f32 %v603_v19, %v593_v53  ;;  %1309 = vmatpush1.bf16.msra.mxu1 %v1864_v48  ;;  %v619_v60 = vmax.f32 %v611_v52, 0.0  ;;  %v1902_v19 = vld [vmem:[%s2381_s3 + $0x254] ss:$24 sps:$4 sm:$0xff]  }
 0x13e   : > { %v620_v58 = vmax.f32 %v612_v54, 0.0  ;;  %1310 = vmatprep.subr.bf16.mxu1 %v1869_v51 }
 0x13f   : > { %v621_v61 = vmax.f32 %v613_v55, 0.0 }
 0x140   : > { %v2264_v62 = vpack.c.bf16 %v620_v58, %v618_v57 }
 0x141   : > { %1311 = vmatpush1.bf16.msra.mxu1 %v1867_v56  ;;  %v625_v63 = vpack.c.bf16 %v621_v61, %v619_v60 }
 0x142   : > { %1312 = vmatprep.subr.bf16.mxu1 %v1872_v59 }
 0x143   : > { %1244 = vmatprep.mubr.bf16.mxu1 %v625_v63  ;;  %1297 = vmatprep.mubr.bf16.mxu0 %v625_v63 }
 0x144   : > { %1245 = vmatmul.mubr.bf16.gmra.mrb[4].mxu1 %v2264_v62  ;;  %1298 = vmatmul.mubr.bf16.gmra.mrb[36].mxu0 %v2264_v62 }
 0x145   : > { %1313 = vmatpush1.bf16.msra.mxu1 %v1870_v0  ;;  %1340 = vmatprep.mubr.bf16.mxu1 %v623_v47 }
 0x146   : > { %1314 = vmatprep.subr.bf16.mxu1 %v1875_v1 }
 0x149   : > { %1315 = vmatpush1.bf16.msra.mxu1 %v1873_v2 }
 0x14a   : > { %1316 = vmatprep.subr.bf16.mxu1 %v1878_v3 }
 0x14d   : > { %1317 = vmatpush1.bf16.msra.mxu1 %v1876_v4 }
 0x14e   : > { %1318 = vmatprep.subr.bf16.mxu1 %v1881_v5 }
 0x151   : > { %1319 = vmatpush1.bf16.msra.mxu1 %v1879_v6 }
 0x152   : > { %1320 = vmatprep.subr.bf16.mxu1 %v1884_v7 }
 0x155   : > { %1321 = vmatpush1.bf16.msra.mxu1 %v1882_v8 }
 0x156   : > { %1322 = vmatprep.subr.bf16.mxu1 %v1887_v9 }
 0x159   : > { %1323 = vmatpush1.bf16.msra.mxu1 %v1885_v10 }
 0x15a   : > { %1324 = vmatprep.subr.bf16.mxu1 %v1890_v11 }
 0x15d   : > { %1325 = vmatpush1.bf16.msra.mxu1 %v1888_v12 }
 0x15e   : > { %1326 = vmatprep.subr.bf16.mxu1 %v1893_v13 }
 0x161   : > { %1327 = vmatpush1.bf16.msra.mxu1 %v1891_v14 }
 0x162   : > { %1328 = vmatprep.subr.bf16.mxu1 %v1896_v15 }
 0x165   : > { %1329 = vmatpush1.bf16.msra.mxu1 %v1894_v16 }
 0x166   : > { %1330 = vmatprep.subr.bf16.mxu1 %v1899_v17 }
 0x169   : > { %1331 = vmatpush1.bf16.msra.mxu1 %v1897_v18 }
 0x16a   : > { %1332 = vmatprep.subr.bf16.mxu1 %v1902_v19 }
 0x16d   : > { %1333 = vmatpush1.bf16.msra.mxu1 %v1900_v20 }
 0x16e   : > { %1334 = vmatprep.subr.bf16.mxu1 %v1905_v21 }
 0x171   : > { %1335 = vmatpush1.bf16.msra.mxu1 %v1903_v22 }
 0x172   : > { %1336 = vmatprep.subr.bf16.mxu1 %v1908_v23 }
 0x175   : > { %1337 = vmatpush1.bf16.msra.mxu1 %v1906_v24 }
 0x176   : > { %1338 = vmatprep.subr.bf16.mxu1 %v1911_v25 }
 0x179   : > { %1339 = vmatpush1.bf16.msra.mxu1 %v1909_v26 }
 0x17c   : > { %1341 = vmatmul.mubr.bf16.vlgmr.msra.gmra.mrb[8].mxu1 %v2248_v44 }
 0x17d   : > { %1350 = vmatprep.mubr.bf16.mxu1 %v625_v63 }
 0x184   : > { %1351 = vmatmul.mubr.bf16.gmra.mrb[12].mxu1 %v2264_v62 }
 0x20f   : > { %v1236_v27 = vpop.f32.mrb[0].mxu1  ;;  %v1289_v28 = vpop.f32.mrb[32].mxu0 }
 0x210   : > { %v1238_v29 = vpop.f32.mrb[1].mxu1  ;;  %v1291_v30 = vpop.f32.mrb[33].mxu0  ;;  %v1370_v33 = vrot.slane %v1289_v28, 1 }
 0x211   : > { %v1240_v31 = vpop.f32.mrb[2].mxu1  ;;  %v1293_v32 = vpop.f32.mrb[34].mxu0  ;;  %v1373_v37 = vrot.slane %v1291_v30, 1 }
 0x212   : > { %v1371_v34 = vrot.slane %v1293_v32, 1  ;;  %v1242_v35 = vpop.f32.mrb[3].mxu1  ;;  %v1295_v36 = vpop.f32.mrb[35].mxu0 }
 0x213   : > { %v1374_v38 = vrot.slane %v1295_v36, 1  ;;  %v1702_v36 = vld [vmem:[%s2382_s4] ss:$0 sm:$0xff] }
 0x214   : > { %v1372_v39 = vsel %vm1369_vm3, %v1370_v33, %v1371_v34 }
 0x215   : > { %v1392_v40 = vadd.f32 %v1372_v39, %v1236_v27  ;;  %v1375_v41 = vsel %vm1369_vm3, %v1373_v37, %v1374_v38 }
 0x216   : > { %v1393_v42 = vadd.f32 %v1375_v41, %v1238_v29 }
 0x217   : > { %v1246_v43 = vpop.f32.mrb[4].mxu1  ;;  %v1299_v44 = vpop.f32.mrb[36].mxu0 }
 0x218   : > { %v1376_v45 = vrot.slane %v1299_v44, 1  ;;  %v1248_v46 = vpop.f32.mrb[5].mxu1  ;;  %v1301_v47 = vpop.f32.mrb[37].mxu0 }
 0x219   : > { %v1378_v48 = vrot.slane %v1301_v47, 1  ;;  %v1250_v49 = vpop.f32.mrb[6].mxu1  ;;  %v1303_v50 = vpop.f32.mrb[38].mxu0 }
 0x21a   : > { %v1377_v51 = vsel %vm1369_vm3, %v1371_v34, %v1376_v45  ;;  %v1380_v52 = vrot.slane %v1303_v50, 1  ;;  %v1252_v53 = vpop.f32.mrb[7].mxu1  ;;  %v1305_v54 = vpop.f32.mrb[39].mxu0 }
 0x21b   : > { %v1394_v55 = vadd.f32 %v1377_v51, %v1240_v31  ;;  %v1379_v56 = vsel %vm1369_vm3, %v1374_v38, %v1378_v48  ;;  %v1382_v57 = vrot.slane %v1305_v54, 1 }
 0x21c   : > { %v1395_v58 = vadd.f32 %v1379_v56, %v1242_v35  ;;  %v1381_v59 = vsel %vm1369_vm3, %v1376_v45, %v1380_v52  ;;  %v1398_v60 = vadd.f32 %v1380_v52, %v1250_v49 }
 0x21d   : > { %v1396_v61 = vadd.f32 %v1381_v59, %v1246_v43  ;;  %v1383_v62 = vsel %vm1369_vm3, %v1378_v48, %v1382_v57  ;;  %v1399_v63 = vadd.f32 %v1382_v57, %v1252_v53 }
 0x21e   : > { %v1397_v0 = vadd.f32 %v1383_v62, %v1248_v46 }
 0x24f   : > { %v1342_v1 = vpop.f32.mrb[8].mxu1 }
 0x250   : > { %v1344_v2 = vpop.f32.mrb[9].mxu1  ;;  %v1409_v4 = vrot.slane %v1342_v1, 2 }
 0x251   : > { %v1346_v3 = vpop.f32.mrb[10].mxu1  ;;  %v1412_v7 = vrot.slane %v1344_v2, 2 }
 0x252   : > { %v1410_v5 = vrot.slane %v1346_v3, 2  ;;  %v1348_v6 = vpop.f32.mrb[11].mxu1 }
 0x253   : > { %v1413_v8 = vrot.slane %v1348_v6, 2 }
 0x254   : > { %v1411_v9 = vsel %vm1408_vm4, %v1409_v4, %v1410_v5 }
 0x255   : > { %v1431_v10 = vadd.f32 %v1411_v9, %v1392_v40  ;;  %v1414_v11 = vsel %vm1408_vm4, %v1412_v7, %v1413_v8 }
 0x256   : > { %v1432_v12 = vadd.f32 %v1414_v11, %v1393_v42 }
 0x257   : > { %v1352_v13 = vpop.f32.mrb[12].mxu1 }
 0x258   : > { %v1439_v14 = vmax.f32 %v1431_v10, %v1432_v12  ;;  %v1415_v15 = vrot.slane %v1352_v13, 2  ;;  %v1354_v16 = vpop.f32.mrb[13].mxu1 }
 0x259   : > { %v1417_v17 = vrot.slane %v1354_v16, 2  ;;  %v1356_v18 = vpop.f32.mrb[14].mxu1 }
 0x25a   : > { %v1445_v19 = vrot.slane %v1439_v14, 1  ;;  %v1416_v20 = vsel %vm1408_vm4, %v1410_v5, %v1415_v15  ;;  %v1419_v21 = vrot.slane %v1356_v18, 2  ;;  %v1358_v22 = vpop.f32.mrb[15].mxu1 }
 0x25b   : > { %v1433_v23 = vadd.f32 %v1416_v20, %v1394_v55  ;;  %v1418_v24 = vsel %vm1408_vm4, %v1413_v8, %v1417_v17  ;;  %v1421_v25 = vrot.slane %v1358_v22, 2 }
 0x25c   : > { %v1447_v26 = vmax.f32 %v1439_v14, %v1445_v19  ;;  %v1434_v27 = vadd.f32 %v1418_v24, %v1395_v58  ;;  %v1420_v28 = vsel %vm1408_vm4, %v1415_v15, %v1419_v21  ;;  %v1437_v29 = vadd.f32 %v1419_v21, %v1398_v60 }
 0x25d   : > { %v1435_v30 = vadd.f32 %v1420_v28, %v1396_v61  ;;  %v1422_v31 = vsel %vm1408_vm4, %v1417_v17, %v1421_v25  ;;  %v1438_v32 = vadd.f32 %v1421_v25, %v1399_v63 }
 0x25e   : > { %v1449_v33 = vrot.slane %v1447_v26, 1  ;;  %v1440_v34 = vmax.f32 %v1433_v23, %v1434_v27  ;;  %v1436_v35 = vadd.f32 %v1422_v31, %v1397_v0 }
 0x25f   : > { %v1442_v37 = vmax.f32 %v1437_v29, %v1438_v32 }
 0x260   : > { %v1463_v38 = vrot.slane %v1440_v34, 1  ;;  %v1441_v39 = vmax.f32 %v1435_v30, %v1436_v35  ;;  %v1452_v40 = vsel %vm1451_vm5, %v1447_v26, %v1449_v33 }
 0x261   : > { %v1459_v41 = vadd.f32 %v1702_v36, %v1452_v40  ;;  %v1487_v42 = vrot.slane %v1442_v37, 1 }
 0x262   : > { %v1465_v43 = vmax.f32 %v1440_v34, %v1463_v38  ;;  %v1475_v44 = vrot.slane %v1441_v39, 1 }
 0x263   : > { %v1460_v45 = vmax.f32 %v1459_v41, 0.0  ;;  %v1489_v46 = vmax.f32 %v1442_v37, %v1487_v42 }
 0x264   : > { %v1467_v47 = vrot.slane %v1465_v43, 1  ;;  %v1477_v48 = vmax.f32 %v1441_v39, %v1475_v44 }
 0x265   : > { %1461 = vst [vmem:[%s229_s29] sm:$0x3] %v1460_v45  ;;  %v1491_v49 = vrot.slane %v1489_v46, 1 }
 0x266   : > { %v1469_v50 = vsel %vm1451_vm5, %v1465_v43, %v1467_v47  ;;  %v1479_v51 = vrot.slane %v1477_v48, 1 }
 0x267   : > { %v1470_v52 = vadd.f32 %v1702_v36, %v1469_v50  ;;  %v1493_v53 = vsel %vm1451_vm5, %v1489_v46, %v1491_v49 }
 0x268   : > { %v1481_v54 = vsel %vm1451_vm5, %v1477_v48, %v1479_v51  ;;  %v1494_v55 = vadd.f32 %v1702_v36, %v1493_v53 }
 0x269   : > { %v1471_v56 = vmax.f32 %v1470_v52, 0.0  ;;  %v1482_v57 = vadd.f32 %v1702_v36, %v1481_v54 }
 0x26a   : > { %v1495_v59 = vmax.f32 %v1494_v55, 0.0 }
 0x26b   : > { %1703 = vst [vmem:[%s229_s29 + $0x2] sm:$0x3] %v1471_v56  ;;  %v1483_v58 = vmax.f32 %v1482_v57, 0.0 }
 0x26c   : > { %1705 = vst [vmem:[%s229_s29 + $0x6] sm:$0x3] %v1495_v59 }
 0x26d   : > { %1704 = vst [vmem:[%s229_s29 + $0x4] sm:$0x3] %v1483_v58 }
 0x26e PF: > { %s15_s18 = sadd.s32 1, %s1918_s18  }
 0x26f   : > { %p12_p5 = scmp.ge.s32.totalorder %s15_s18, 4  }
 0x271   :  { %14 = sbr.rel (!%p12_p5) target bundleno = 1 (0x1), region = 73 }

</bundles_post_ra>
